<compile_context>
chip_gen: v6e
topology: v6e:2x2x1
jax: 0.10.0
libtpu: 0.0.40
codegen_flags: <defaults>
</compile_context>

<pallas_src>
import functools

import jax
import jax.numpy as jnp
from jax.experimental import pallas as pl
from jax.experimental.pallas import tpu as pltpu

K = 8  # patch size, fixed by the module
# Per-step *padded* VMEM budget for one input block. ~2 MiB keeps the tiled-copy curve
# at >=85% of HBM roofline on v5e/v6e and amortizes the ~0.35us/step overhead on v7x,
# while in+out double buffers + unrolled-rr transients stay well under 48 MiB.
_TARGET_TILE_BYTES = 2 * 1024 * 1024


def _merge_kernel(p_ref, o_ref, *, r, wb, cpr):
    # p_ref: (r, wb, 8*cpr)  r strips; sublane axis = patch index w within the strip,
    #                        lane axis = 8 patch rows x cpr 32-bit words per row.
    # o_ref: (r, 8, wb*cpr)  identical memory layout to the (r*8, W) output slab.
    w_units = wb * cpr
    rows = []
    for rr in range(K):                                 # statically unrolled
        sl = p_ref[:, :, rr * cpr:(rr + 1) * cpr]       # lane-offset LOAD: (r, wb, cpr)
        rows.append(sl.reshape(r, w_units))             # granule interleave -> lane-dense rows
    # Sublane-only interleave of the 8 lane-dense row sets, then ONE dense store.
    o_ref[...] = jnp.stack(rows, axis=1)


def _strips_per_step(total, strip_vmem_bytes, target_bytes=_TARGET_TILE_BYTES):
    """Largest divisor r of `total` whose padded input tile fits the budget, preferring
    at least 2 grid steps so megacore sharding / double buffering have work to split."""
    divisors = [d for d in range(1, total + 1) if total % d == 0]
    fitting = [d for d in divisors if d * strip_vmem_bytes <= target_bytes]
    if not fitting:
        return 1  # r=1 is legal here: r sits on a non-minor block axis (see BlockSpec).
    r = max(fitting)
    if r == total and total > 1:
        smaller = [d for d in fitting if d < total]
        if smaller:
            r = max(smaller)  # keep >= 2 grid steps
    return r


def block_merging(patches, height, width):
    """Merge 8x8 patches back into an image.

    patches: (B, (height//8)*(width//8), 8, 8)
    returns: (B, height, width)
    """
    assert height % K == 0 and width % K == 0, (height, width)
    b = patches.shape[0]
    hb, wb = height // K, width // K
    assert patches.shape == (b, hb * wb, K, K), patches.shape

    orig_dtype = patches.dtype
    itemsize = jnp.dtype(orig_dtype).itemsize

    # Pack sub-32-bit dtypes into u32 containers so the granule shuffle runs at 32-bit
    # lane width (bits are unchanged: the kernel is a pure permutation of whole groups).
    if itemsize < 4:
        pack = 4 // itemsize
        cpr = K // pack  # 32-bit storage words per patch row
        x = jax.lax.bitcast_convert_type(
            patches.reshape(b, hb * wb, K, cpr, pack), jnp.uint32)
        dtype = jnp.uint32
    else:
        pack, cpr, x, dtype = 1, K, patches, orig_dtype

    total = b * hb                      # batch and strip axes collapsed -> one long grid
    w_units = wb * cpr                  # output row width, in storage words
    # Free, contiguous reshape: one 8-image-row strip per leading index, one patch per row.
    x = x.reshape(total, wb, K * cpr)

    # Padded VMEM bytes of one strip in the (wb, 8*cpr) layout (lanes pad to 128, sublanes to 8).
    storage_itemsize = jnp.dtype(dtype).itemsize
    strip_vmem_bytes = ((wb + 7) // 8) * 8 * 128 * storage_itemsize

    r = _strips_per_step(total, strip_vmem_bytes)
    grid = (total // r,)

    kernel = functools.partial(_merge_kernel, r=r, wb=wb, cpr=cpr)

    out = pl.pallas_call(
        kernel,
        out_shape=jax.ShapeDtypeStruct((total, K, w_units), dtype),
        grid_spec=pltpu.PrefetchScalarGridSpec(
            num_scalar_prefetch=0,
            grid=grid,
            in_specs=[
                # r strips per step; minor dims (wb, 8*cpr) are full-extent, so the
                # (8,128) block rule holds for ANY r (including r == 1).
                pl.BlockSpec((r, wb, K * cpr), lambda i: (i, 0, 0)),
            ],
            # Lane-dense output slab: (r, 8, W) is layout-identical to (r*8, W).
            out_specs=pl.BlockSpec((r, K, w_units), lambda i: (i, 0, 0)),
        ),
        compiler_params=pltpu.CompilerParams(
            dimension_semantics=("parallel",),
            vmem_limit_bytes=48 * 1024 * 1024,
        ),
        cost_estimate=pl.CostEstimate(
            flops=0,
            transcendentals=0,
            bytes_accessed=2 * b * height * width * itemsize,
        ),
    )(x)

    if pack > 1:
        out = jax.lax.bitcast_convert_type(out, orig_dtype)  # (total, 8, w_units, pack)
    return out.reshape(b, height, width)


def block_merging_ref(patches, height, width):
    """Pure-JAX reference, mirroring the PyTorch forward exactly."""
    b = patches.shape[0]
    y = patches.reshape(b, height // K, width // K, K, K)
    y = jnp.transpose(y, (0, 1, 3, 2, 4))
    return y.reshape(b, height, width)


if __name__ == "__main__":
    # block_merging has no parameters (empty __init__), nothing to initialize.
    key = jax.random.PRNGKey(0)
    cases = (
        ((2, 16, 16), jnp.float32),    # tiny smoke test (W < 128 path)
        ((2, 32, 256), jnp.float32),   # lane-dense rows (W multiple of 128)
        ((2, 32, 256), jnp.bfloat16),  # packed sub-32-bit path (u32 containers)
    )
    for (batch, height, width), dtype in cases:
        n_patches = (height // K) * (width // K)
        key, sub = jax.random.split(key)
        patches = jax.random.normal(
            sub, (batch, n_patches, K, K), dtype=jnp.float32).astype(dtype)

        out = jax.block_until_ready(block_merging(patches, height, width))
        ref = block_merging_ref(patches, height, width)
        assert out.shape == (batch, height, width), out.shape
        assert out.dtype == patches.dtype, out.dtype
        assert jnp.array_equal(out, ref), f"mismatch vs. reference at {(batch, height, width, dtype)}"

    print("KERNEL_OK")
</pallas_src>

<mosaic_0001>
module attributes {stable_mosaic.version = 11 : i64} {
  func.func @_merge_kernel(%arg0: i32, %arg1: memref<2x2x64xf32, #tpu.memory_space<vmem>>, %arg2: memref<2x8x16xf32, #tpu.memory_space<vmem>>) attributes {dimension_semantics = [#tpu.dimension_semantics<parallel>], iteration_bounds = array<i64: 2>, scalar_prefetch = 0 : i64, scratch_operands = 0 : i64, tpu.core_type = #tpu.core_type<tc>, window_params = [{transform_indices = @transform_0, window_bounds = array<i64: 2, 2, 64>}, {transform_indices = @transform_1, window_bounds = array<i64: 2, 8, 16>}]} {
    %c0 = arith.constant 0 : index
    %c0_0 = arith.constant 0 : index
    %c0_1 = arith.constant 0 : index
    %0 = vector.load %arg1[%c0, %c0_0, %c0_1] : memref<2x2x64xf32, #tpu.memory_space<vmem>>, vector<2x2x8xf32>
    %1 = vector.shape_cast %0 : vector<2x2x8xf32> to vector<2x16xf32>
    %c0_2 = arith.constant 0 : index
    %c0_3 = arith.constant 0 : index
    %c8 = arith.constant 8 : index
    %2 = vector.load %arg1[%c0_2, %c0_3, %c8] : memref<2x2x64xf32, #tpu.memory_space<vmem>>, vector<2x2x8xf32>
    %3 = vector.shape_cast %2 : vector<2x2x8xf32> to vector<2x16xf32>
    %c0_4 = arith.constant 0 : index
    %c0_5 = arith.constant 0 : index
    %c16 = arith.constant 16 : index
    %4 = vector.load %arg1[%c0_4, %c0_5, %c16] : memref<2x2x64xf32, #tpu.memory_space<vmem>>, vector<2x2x8xf32>
    %5 = vector.shape_cast %4 : vector<2x2x8xf32> to vector<2x16xf32>
    %c0_6 = arith.constant 0 : index
    %c0_7 = arith.constant 0 : index
    %c24 = arith.constant 24 : index
    %6 = vector.load %arg1[%c0_6, %c0_7, %c24] : memref<2x2x64xf32, #tpu.memory_space<vmem>>, vector<2x2x8xf32>
    %7 = vector.shape_cast %6 : vector<2x2x8xf32> to vector<2x16xf32>
    %c0_8 = arith.constant 0 : index
    %c0_9 = arith.constant 0 : index
    %c32 = arith.constant 32 : index
    %8 = vector.load %arg1[%c0_8, %c0_9, %c32] : memref<2x2x64xf32, #tpu.memory_space<vmem>>, vector<2x2x8xf32>
    %9 = vector.shape_cast %8 : vector<2x2x8xf32> to vector<2x16xf32>
    %c0_10 = arith.constant 0 : index
    %c0_11 = arith.constant 0 : index
    %c40 = arith.constant 40 : index
    %10 = vector.load %arg1[%c0_10, %c0_11, %c40] : memref<2x2x64xf32, #tpu.memory_space<vmem>>, vector<2x2x8xf32>
    %11 = vector.shape_cast %10 : vector<2x2x8xf32> to vector<2x16xf32>
    %c0_12 = arith.constant 0 : index
    %c0_13 = arith.constant 0 : index
    %c48 = arith.constant 48 : index
    %12 = vector.load %arg1[%c0_12, %c0_13, %c48] : memref<2x2x64xf32, #tpu.memory_space<vmem>>, vector<2x2x8xf32>
    %13 = vector.shape_cast %12 : vector<2x2x8xf32> to vector<2x16xf32>
    %c0_14 = arith.constant 0 : index
    %c0_15 = arith.constant 0 : index
    %c56 = arith.constant 56 : index
    %14 = vector.load %arg1[%c0_14, %c0_15, %c56] : memref<2x2x64xf32, #tpu.memory_space<vmem>>, vector<2x2x8xf32>
    %15 = vector.shape_cast %14 : vector<2x2x8xf32> to vector<2x16xf32>
    %16 = vector.shape_cast %1 : vector<2x16xf32> to vector<2x1x16xf32>
    %17 = vector.shape_cast %3 : vector<2x16xf32> to vector<2x1x16xf32>
    %18 = vector.shape_cast %5 : vector<2x16xf32> to vector<2x1x16xf32>
    %19 = vector.shape_cast %7 : vector<2x16xf32> to vector<2x1x16xf32>
    %20 = vector.shape_cast %9 : vector<2x16xf32> to vector<2x1x16xf32>
    %21 = vector.shape_cast %11 : vector<2x16xf32> to vector<2x1x16xf32>
    %22 = vector.shape_cast %13 : vector<2x16xf32> to vector<2x1x16xf32>
    %23 = vector.shape_cast %15 : vector<2x16xf32> to vector<2x1x16xf32>
    %24 = tpu.concatenate %16, %17, %18, %19, %20, %21, %22, %23 in 1 : vector<2x1x16xf32>, vector<2x1x16xf32>, vector<2x1x16xf32>, vector<2x1x16xf32>, vector<2x1x16xf32>, vector<2x1x16xf32>, vector<2x1x16xf32>, vector<2x1x16xf32> -> vector<2x8x16xf32>
    %c0_16 = arith.constant 0 : index
    %c0_17 = arith.constant 0 : index
    %c0_18 = arith.constant 0 : index
    %25 = vector.load %arg2[%c0_16, %c0_17, %c0_18] : memref<2x8x16xf32, #tpu.memory_space<vmem>>, vector<2x8x16xf32>
    tpu.vector_store %arg2[%c0_16, %c0_17, %c0_18], %24 {strides = array<i32>} : memref<2x8x16xf32, #tpu.memory_space<vmem>>, vector<2x8x16xf32>,
    return
  }
  func.func @transform_0(%arg0: i32) -> (i32, i32, i32) {
    %c0_i32 = arith.constant 0 : i32
    %c0_i32_0 = arith.constant 0 : i32
    %c0_i32_1 = arith.constant 0 : i32
    return %arg0, %c0_i32, %c0_i32_0 : i32, i32, i32
  }
  func.func @transform_1(%arg0: i32) -> (i32, i32, i32) {
    %c0_i32 = arith.constant 0 : i32
    %c0_i32_0 = arith.constant 0 : i32
    %c0_i32_1 = arith.constant 0 : i32
    return %arg0, %c0_i32, %c0_i32_0 : i32, i32, i32
  }
}

</mosaic_0001>

<bundles_post_ra>
// kernel: tpu_custom_call.1
= control target key start
LH: loop header
LB: loop body
LE: loop exit
PB: predicated region body
PF: predicated region fallthrough
CT: control target
= control target key end

     0   :  { %6 = vsyncpa [#allocation3], 0  ;;  %s1009_s0 = inlined_call_operand.hbm [shape: f32[4,2,64], index: 0, kind: input, shape index: {}]   ;;  %s1010_s1 = inlined_call_operand.hbm [shape: f32[4,8,16], index: 1, kind: output, shape index: {}]  }
   0x1   :  { %8 = vsyncpa [#allocation3 + $0x1], 0 }
   0x2   :  { %9 = vsyncpa [#allocation4], 0 }
   0x3   :  { %11 = vsyncpa [#allocation4 + $0x1], 0  ;;  %s739_s6 = smov 0   ;;  %s741_s7 = smov 0  }
   0x4   :  { %s743_s8 = smov 0   ;;  %s745_s9 = smov 0  }
   0x5 LB: > { %s760_s10 = sadd.s32 4294967295, %s712_s9   ;;  %s545_s11 = sadd.s32 4294967294, %s712_s9   ;;  %s712_s9 = sphi %s745_s9, %s1025_s9   ;;  %s708_s8 = sphi %s743_s8, %s1024_s8   ;;  %s704_s7 = sphi %s741_s7, %s1023_s7   ;;  %s700_s6 = sphi %s739_s6, %s1022_s6  }
   0x6   : > { %s764_s12 = sadd.s32 1, %s712_s9   ;;  %s24_s13 = sadd.s32 1, %s708_s8 }
   0x7   : > { %s21_s14 = ssub.s32 %s712_s9, %s764_s12  ;;  %p31_p0 = scmp.ne.s32.totalorder %s708_s8, %s704_s7 }
   0x8   : > { %p22_p1 = scmp.eq.s32.totalorder %s21_s14, 0  ;;  %p32_p2 = scmp.eq.s32.totalorder %s712_s9, 0 }
   0x9   : > { %p37_p3 = scmp.ne.s32.totalorder %s704_s7, %s700_s6  ;;  %p38_p4 = scmp.eq.s32.totalorder %s760_s10, 0 }
   0xa   : > { %s776_s15 = scalar_select %p22_p1, %s708_s8, %s24_s13  }
   0xb   : > { %p778_p5 = por %p32_p2, %p31_p0  ;;  %p782_p6 = por %p38_p4, %p37_p3 }
   0xc   : > { %p61_p7 = scmp.eq.s32.totalorder %s760_s10, 1  ;;  %p67_p8 = scmp.eq.s32.totalorder %s545_s11, 1 }
   0xd   : > { %s1014_s17 = scalar_select %p782_p6, 1, 0 }
   0xe   : > { %p573_p10 = scmp.lt.s32.totalorder %s712_s9, 2  ;;  %p789_p11 = por %p61_p7, %p31_p0 }
   0xf   : > { %p793_p12 = por %p67_p8, %p37_p3  ;;  %s87_s20 = sand.u32 1, %s708_s8  }
  0x10   : > { %s1015_s18 = scalar_select %p789_p11, 1, 0 }
  0x11   : > { %s1016_s19 = scalar_select %p793_p12, 1, 0 }
  0x12   : > { %s559_s21 = sshll.u32 %s712_s9, 6  ;;  %s548_s22 = sshll.u32 %s87_s20, 2 }
  0x13   : > { %s802_s25 = scalar_lea.hbm %s1009_s0, %s559_s21  ;;  %s91_s26 = scalar_lea.vmem [#allocation2], %s548_s22 }
  0x14   : > { %s98_s27 = sshll.u32 %s91_s26, 4  ;;  %p806_p13 = pnand %p573_p10, %p778_p5  ;;  %s810_s27 = int_to_ptr.vmem [resolvable:$true] %s98_s27 }
  0x15   : > { %s812_s29 = scalar_lea.sflag [#allocation3], %s87_s20  ;;  %s620_s30 = scalar_lea.hbm %s802_s25, 64 }
  0x16   : > { %p621_p0 = scmp.ne.s32.totalorder %s802_s25, %s620_s30  ;;  %p622_p1 = pneg %p806_p13 }
  0x17   : > { %s625_s4 = scalar_lea.hbm %s1009_s0, 128  ;;  %p626_p4 = scmp.lt.s32.totalorder %s802_s25, %s1009_s0 }
  0x18   : > { %p623_p2 = pnand %p622_p1, %p621_p0  ;;  %p627_p5 = scmp.lt.s32.totalorder %s625_s4, %s620_s30 }
  0x1a   : > { %p624_p3 = pneg %p623_p2  ;;  %p628_p7 = por %p627_p5, %p626_p4 }
  0x1c   : > { %p629_p8 = pnand %p628_p7, %p624_p3 }
  0x1e   : > { %632 = shalt.err (!%p629_p8)
}
  0x1f   : > { %s633_s13 = scalar_lea.vmem %s810_s27, 64  ;;  %s714_s14 = smov [#allocation2]  }
  0x20   : > { %p634_p10 = scmp.ne.s32.totalorder %s810_s27, %s633_s13  ;;  %s638_s16 = sshll.u32 %s714_s14, 4  ;;  %s639_s16 = int_to_ptr.vmem [resolvable:$false] %s638_s16 }
  0x21   : > { %s640_s20 = scalar_lea.vmem %s639_s16, 128  ;;  %p641_p2 = scmp.lt.s32.totalorder %s810_s27, %s639_s16 }
  0x22   : > { %p636_p9 = pnand %p634_p10, %p622_p1  ;;  %p642_p12 = scmp.lt.s32.totalorder %s640_s20, %s633_s13 }
  0x24   : > { %p637_p0 = pneg %p636_p9  ;;  %p643_p11 = por %p642_p12, %p641_p2 }
  0x26   : > { %p644_p6 = pnand %p643_p11, %p637_p0 }
  0x28   : > { %647 = shalt.err (!%p644_p6)
}
  0x29   : > { %s715_s21 = smov 32   ;;  %s716_s22 = smov 2  }
  0x2a   : > { %568 = dma.hbm_to_vmem [thread:$0]  (!%p806_p13), %s802_s25, 64, %s810_s27, %s812_s29, %s715_s21, %s715_s21, %s716_s22  }
  0x2b   : > { %p551_p9 = scmp.ge.s32.totalorder %s712_s9, 1  ;;  %p106_p1 = scmp.lt.s32.totalorder %s712_s9, 3 }
  0x2d   : > { %p107_p3 = pnand %p551_p9, %p106_p1 }
  0x2e   : > { %s836_s23 = sand.u32 (!%p107_p3), 1, %s704_s7   ;;  %p1018_p6 = scmp.ne.s32.totalorder (!%p107_p3), %s1014_s17, 0 }
  0x2f   : > { %110 = sbr.rel (%p107_p3) target bundleno = 334 (0x14e), region = 24  ;;  %s552_s24 = sshll.u32 (!%p107_p3), %s836_s23, 2 }
  0x30   : > { %s113_s26 = scalar_lea.sflag (!%p107_p3), [#allocation3], %s836_s23  ;;  %s116_s30 = scalar_lea.vmem (!%p107_p3), [#allocation2], %s552_s24 }
  0x34   : > { %691 = dma.done.wait (%p1018_p6), %s113_s26, 64  }
  0x35   : > { %693 = vsyncadd (%p1018_p6), %s113_s26, 4294967232  ;;  %v137_v0 = vld [vmem:[%s116_s30] sm:$0x3]  ;;  %s717_s25 = smov 120   ;;  %s718_s27 = smov 112   ;;  %v142_v4 = vlaneseq  ;;  %v725_v10 = vmov 0.0  }
  0x36   : > { %168 = vrot.lane.b32.xlu0 %v137_v0, %s717_s25  ;;  %200 = vrot.lane.b32.xlu1 %v137_v0, %s718_s27  ;;  %v138_v1 = vld [vmem:[%s116_s30 + $0x2] sm:$0x3]  ;;  %s719_s28 = smov 104   ;;  %v720_v2 = vmov 1934713408   ;;  %s721_s29 = smov 96  }
  0x37   : > { %v140_v3 = vunpack.c.l.s4 %v720_v2  ;;  %v143_v6 = vshrl.u32 %v142_v4, 7  ;;  %s722_s17 = smov 88   ;;  %s723_s2 = smov 80   ;;  %vm163_vm0 = vcmask 64512   ;;  %vm434_vm1 = vcmask 1040384  }
  0x38   : > { %s724_s3 = smov 72   ;;  %s726_s4 = smov 8   ;;  %vm437_vm2 = vcmask 1041408   ;;  %vm440_vm3 = vcmask 1042432   ;;  %vm443_vm4 = vcmask 1043456   ;;  %vm446_vm5 = vcmask 1044480  }
  0x39   : > { %v141_v5 = vunpack.c.0.s8 %v140_v3  ;;  %vm449_vm6 = vcmask 1045504   ;;  %vm452_vm7 = vcmask 1046528   ;;  %s553_s5 = sshll.u32 %s836_s23, 4  ;;  %vm455_vm8 = vcmask 130048   ;;  %s560_s11 = sshll.u32 %s760_s10, 8 }
  0x3a   : > { %170 = vrot.lane.b32.xlu0 %v138_v1, %s717_s25  ;;  %202 = vrot.lane.b32.xlu1 %v138_v1, %s718_s27  ;;  %s134_s13 = scalar_lea.vmem [#allocation5], %s553_s5  ;;  %s960_s20 = scalar_lea.hbm %s1010_s1, %s560_s11 }
  0x3b   : > { %v844_v7 = vsub.s32 %v141_v5, %v143_v6  ;;  %s472_s14 = sshll.u32 %s134_s13, 4  ;;  %s459_s21 = scalar_lea.sflag [#allocation4], %s836_s23  ;;  %s963_s14 = int_to_ptr.vmem [resolvable:$true] %s472_s14 }
  0x3c   : > { %s648_s22 = scalar_lea.vmem %s963_s14, 256  ;;  %p1019_p12 = scmp.ne.s32.totalorder %s1015_s18, 0 }
  0x3d   : > { %v847_v8 = vrot.slane %v137_v0, %v844_v7  ;;  %v850_v9 = vrot.slane %v138_v1, %v844_v7  ;;  %p649_p11 = scmp.ne.s32.totalorder %s963_s14, %s648_s22  ;;  %s727_s24 = smov [#allocation5]  }
  0x3e   : > { %232 = vrot.lane.b32.xlu0 %v137_v0, %s719_s28  ;;  %234 = vrot.lane.b32.xlu1 %v138_v1, %s719_s28  ;;  %s652_s26 = sshll.u32 %s727_s24, 4  ;;  %s653_s26 = int_to_ptr.vmem [resolvable:$false] %s652_s26 }
  0x3f   : > { %v146_v11 = vcombine.high %v847_v8, %v725_v10  ;;  %v154_v12 = vcombine.high %v850_v9, %v725_v10  ;;  %p650_p13 = pnand %p649_p11, %p1019_p12  ;;  %s654_s30 = scalar_lea.vmem %s653_s26, 512 }
  0x40   : > { %p655_p5 = scmp.lt.s32.totalorder %s963_s14, %s653_s26  ;;  %p656_p7 = scmp.lt.s32.totalorder %s654_s30, %s648_s22 }
  0x41   : > { %p651_p4 = pneg %p650_p13 }
  0x42   : > { %264 = vrot.lane.b32.xlu0 %v137_v0, %s721_s29  ;;  %266 = vrot.lane.b32.xlu1 %v138_v1, %s721_s29  ;;  %p657_p8 = por %p656_p7, %p655_p5 }
  0x44   : > { %p658_p10 = pnand %p657_p8, %p651_p4 }
  0x46   : > { %296 = vrot.lane.b32.xlu0 %v137_v0, %s722_s17  ;;  %298 = vrot.lane.b32.xlu1 %v138_v1, %s722_s17 }
  0x4a   : > { %328 = vrot.lane.b32.xlu0 %v137_v0, %s723_s2  ;;  %330 = vrot.lane.b32.xlu1 %v138_v1, %s723_s2 }
  0x4e   : > { %360 = vrot.lane.b32.xlu0 %v137_v0, %s724_s3  ;;  %362 = vrot.lane.b32.xlu1 %v138_v1, %s724_s3 }
  0x52   : > { %157 = vrot.lane.b32.xlu0 %v146_v11, %s726_s4  ;;  %159 = vrot.lane.b32.xlu1 %v154_v12, %s726_s4 }
  0xa8   : > { %v169_v13 = vpop.permute.xlu0 %168  ;;  %v201_v14 = vpop.permute.xlu1 %200 }
  0xa9   : > { %v857_v15 = vrot.slane %v169_v13, %v844_v7  ;;  %v860_v16 = vrot.slane %v201_v14, %v844_v7 }
  0xab   : > { %v180_v17 = vcombine.high %v857_v15, %v725_v10  ;;  %v212_v20 = vcombine.high %v860_v16, %v725_v10 }
  0xac   : > { %v171_v18 = vpop.permute.xlu0 %170  ;;  %v203_v19 = vpop.permute.xlu1 %202 }
  0xad   : > { %v865_v21 = vrot.slane %v171_v18, %v844_v7  ;;  %192 = vrot.lane.b32.xlu0 %v180_v17, %s726_s4  ;;  %v869_v22 = vrot.slane %v203_v19, %v844_v7 }
  0xaf   : > { %v189_v23 = vcombine.high %v865_v21, %v725_v10  ;;  %v221_v26 = vcombine.high %v869_v22, %v725_v10 }
  0xb0   : > { %v233_v24 = vpop.permute.xlu0 %232  ;;  %v235_v25 = vpop.permute.xlu1 %234 }
  0xb1   : > { %v243_v27 = vrot.slane %v233_v24, %v844_v7  ;;  %194 = vrot.lane.b32.xlu1 %v189_v23, %s726_s4  ;;  %224 = vrot.lane.b32.xlu0 %v212_v20, %s726_s4  ;;  %v877_v28 = vrot.slane %v235_v25, %v844_v7 }
  0xb3   : > { %v244_v29 = vcombine.high %v243_v27, %v725_v10  ;;  %v253_v32 = vcombine.high %v877_v28, %v725_v10 }
  0xb4   : > { %v265_v30 = vpop.permute.xlu0 %264  ;;  %v267_v31 = vpop.permute.xlu1 %266 }
  0xb5   : > { %v275_v33 = vrot.slane %v265_v30, %v844_v7  ;;  %226 = vrot.lane.b32.xlu1 %v221_v26, %s726_s4  ;;  %256 = vrot.lane.b32.xlu0 %v244_v29, %s726_s4  ;;  %v884_v34 = vrot.slane %v267_v31, %v844_v7 }
  0xb7   : > { %v276_v35 = vcombine.high %v275_v33, %v725_v10  ;;  %v285_v38 = vcombine.high %v884_v34, %v725_v10 }
  0xb8   : > { %v297_v36 = vpop.permute.xlu0 %296  ;;  %v299_v37 = vpop.permute.xlu1 %298 }
  0xb9   : > { %v307_v39 = vrot.slane %v297_v36, %v844_v7  ;;  %258 = vrot.lane.b32.xlu1 %v253_v32, %s726_s4  ;;  %288 = vrot.lane.b32.xlu0 %v276_v35, %s726_s4  ;;  %v891_v40 = vrot.slane %v299_v37, %v844_v7 }
  0xbb   : > { %v308_v41 = vcombine.high %v307_v39, %v725_v10  ;;  %v317_v44 = vcombine.high %v891_v40, %v725_v10 }
  0xbc   : > { %v329_v42 = vpop.permute.xlu0 %328  ;;  %v331_v43 = vpop.permute.xlu1 %330 }
  0xbd   : > { %v339_v45 = vrot.slane %v329_v42, %v844_v7  ;;  %290 = vrot.lane.b32.xlu1 %v285_v38, %s726_s4  ;;  %320 = vrot.lane.b32.xlu0 %v308_v41, %s726_s4  ;;  %v898_v46 = vrot.slane %v331_v43, %v844_v7 }
  0xbf   : > { %v340_v47 = vcombine.high %v339_v45, %v725_v10  ;;  %v349_v50 = vcombine.high %v898_v46, %v725_v10 }
  0xc0   : > { %v361_v48 = vpop.permute.xlu0 %360  ;;  %v363_v49 = vpop.permute.xlu1 %362 }
  0xc1   : > { %v902_v51 = vrot.slane %v361_v48, %v844_v7  ;;  %322 = vrot.lane.b32.xlu1 %v317_v44, %s726_s4  ;;  %352 = vrot.lane.b32.xlu0 %v340_v47, %s726_s4  ;;  %v907_v52 = vrot.slane %v363_v49, %v844_v7 }
  0xc3   : > { %v372_v53 = vcombine.high %v902_v51, %v725_v10  ;;  %v381_v54 = vcombine.high %v907_v52, %v725_v10 }
  0xc4   : > { %v158_v55 = vpop.permute.xlu0 %157  ;;  %v160_v56 = vpop.permute.xlu1 %159 }
  0xc5   : > { %354 = vrot.lane.b32.xlu1 %v349_v50, %s726_s4  ;;  %384 = vrot.lane.b32.xlu0 %v372_v53, %s726_s4 }
  0xc9   : > { %386 = vrot.lane.b32.xlu1 %v381_v54, %s726_s4 }
 0x11f   : > { %v193_v57 = vpop.permute.xlu0 %192 }
 0x120   : > { %v198_v0 = vsel %vm163_vm0, %v857_v15, %v193_v57 }
 0x121   : > { %v394_v5 = vrot.slane %v198_v0, 7 }
 0x123   : > { %v195_v58 = vpop.permute.xlu1 %194  ;;  %v225_v59 = vpop.permute.xlu0 %224 }
 0x124   : > { %v230_v1 = vsel %vm163_vm0, %v860_v16, %v225_v59  ;;  %v199_v7 = vsel %vm163_vm0, %v865_v21, %v195_v58  ;;  %v164_v16 = vsel %vm163_vm0, %v847_v8, %v158_v55 }
 0x125   : > { %v400_v10 = vrot.slane %v230_v1, 6  ;;  %v435_v20 = vsel %vm434_vm1, %v164_v16, %v394_v5  ;;  %v395_v21 = vrot.slane %v199_v7, 7 }
 0x127   : > { %v227_v60 = vpop.permute.xlu1 %226  ;;  %v257_v61 = vpop.permute.xlu0 %256  ;;  %v438_v24 = vsel %vm437_vm2, %v435_v20, %v400_v10 }
 0x128   : > { %v262_v4 = vsel %vm163_vm0, %v243_v27, %v257_v61  ;;  %v231_v12 = vsel %vm163_vm0, %v869_v22, %v227_v60  ;;  %v165_v27 = vsel %vm163_vm0, %v850_v9, %v160_v56 }
 0x129   : > { %v406_v13 = vrot.slane %v262_v4, 5  ;;  %v401_v25 = vrot.slane %v231_v12, 6  ;;  %v436_v36 = vsel %vm434_vm1, %v165_v27, %v395_v21 }
 0x12b   : > { %v259_v62 = vpop.permute.xlu1 %258  ;;  %v289_v63 = vpop.permute.xlu0 %288 }
 0x12c   : > { %v294_v6 = vsel %vm163_vm0, %v275_v33, %v289_v63  ;;  %v263_v17 = vsel %vm163_vm0, %v877_v28, %v259_v62  ;;  %v441_v28 = vsel %vm440_vm3, %v438_v24, %v406_v13 }
 0x12d   : > { %v412_v18 = vrot.slane %v294_v6, 4  ;;  %v407_v29 = vrot.slane %v263_v17, 5 }
 0x12f   : > { %v291_v2 = vpop.permute.xlu1 %290  ;;  %v321_v3 = vpop.permute.xlu0 %320  ;;  %v444_v32 = vsel %vm443_vm4, %v441_v28, %v412_v18 }
 0x130   : > { %v326_v11 = vsel %vm163_vm0, %v307_v39, %v321_v3  ;;  %v295_v22 = vsel %vm163_vm0, %v884_v34, %v291_v2  ;;  %v439_v39 = vsel %vm437_vm2, %v436_v36, %v401_v25 }
 0x131   : > { %v418_v23 = vrot.slane %v326_v11, 3  ;;  %v413_v33 = vrot.slane %v295_v22, 4  ;;  %v442_v42 = vsel %vm440_vm3, %v439_v39, %v407_v29 }
 0x133   : > { %v323_v14 = vpop.permute.xlu1 %322  ;;  %v353_v15 = vpop.permute.xlu0 %352  ;;  %v447_v9 = vsel %vm446_vm5, %v444_v32, %v418_v23 }
 0x134   : > { %v358_v19 = vsel %vm163_vm0, %v339_v45, %v353_v15  ;;  %v327_v26 = vsel %vm163_vm0, %v891_v40, %v323_v14  ;;  %v445_v45 = vsel %vm443_vm4, %v442_v42, %v413_v33 }
 0x135   : > { %v424_v8 = vrot.slane %v358_v19, 2  ;;  %v419_v37 = vrot.slane %v327_v26, 3 }
 0x137   : > { %v355_v30 = vpop.permute.xlu1 %354  ;;  %v385_v31 = vpop.permute.xlu0 %384  ;;  %v450_v40 = vsel %vm449_vm6, %v447_v9, %v424_v8  ;;  %v448_v47 = vsel %vm446_vm5, %v445_v45, %v419_v37 }
 0x138   : > { %v359_v34 = vsel %vm163_vm0, %v898_v46, %v355_v30  ;;  %v390_v35 = vsel %vm163_vm0, %v902_v51, %v385_v31 }
 0x139   : > { %v430_v38 = vrot.slane %v390_v35, 1  ;;  %v425_v41 = vrot.slane %v359_v34, 2 }
 0x13b   : > { %v453_v43 = vsel %vm452_vm7, %v450_v40, %v430_v38  ;;  %v387_v44 = vpop.permute.xlu1 %386  ;;  %v451_v49 = vsel %vm449_vm6, %v448_v47, %v425_v41 }
 0x13c   : > { %456 = vst.msk [vmem:[%s134_s13] sm:$0xff] %vm455_vm8, %v453_v43  ;;  %v391_v46 = vsel %vm163_vm0, %v907_v52, %v387_v44 }
 0x13d   : > { %v431_v48 = vrot.slane %v391_v46, 1 }
 0x13f   : > { %v454_v50 = vsel %vm452_vm7, %v451_v49, %v431_v48 }
 0x140   : > { %457 = vst.msk [vmem:[%s134_s13 + $0x8] sm:$0xff] %vm455_vm8, %v454_v50 }
 0x141   : > { %661 = shalt.err (!%p658_p10)
}
 0x142   : > { %s662_s25 = scalar_lea.hbm %s960_s20, 256  ;;  %s666_s29 = scalar_lea.hbm %s1010_s1, 512 }
 0x143   : > { %p663_p0 = scmp.ne.s32.totalorder %s960_s20, %s662_s25  ;;  %p667_p1 = scmp.lt.s32.totalorder %s960_s20, %s1010_s1 }
 0x144   : > { %p668_p3 = scmp.lt.s32.totalorder %s666_s29, %s662_s25 }
 0x145   : > { %p664_p2 = pnand %p663_p0, %p1019_p12 }
 0x146   : > { %p669_p6 = por %p668_p3, %p667_p1 }
 0x147   : > { %p665_p9 = pneg %p664_p2 }
 0x149   : > { %p670_p11 = pnand %p669_p6, %p665_p9 }
 0x14b   : > { %673 = shalt.err (!%p670_p11)
}
 0x14c   : > { %s728_s3 = smov 128  }
 0x14d   : > { %563 = dma.vmem_to_hbm [thread:$0]  (%p1019_p12), %s963_s14, 256, %s960_s20, %s459_s21, %s728_s3, %s728_s3, %s726_s4  }
 0x14e PF: > { %s487_s5 = sand.u32 1, %s700_s6   ;;  %p1020_p13 = scmp.ne.s32.totalorder %s1016_s19, 0 }
 0x14f   : > { %p1021_p4 = scmp.ge.s32.totalorder %s712_s9, 2  ;;  %s488_s11 = scalar_lea.sflag [#allocation4], %s487_s5 }
 0x151   : > { %p570_p5 = pnand %p1021_p4, %p1020_p13 }
 0x153   : > { %p571_p7 = pneg %p570_p5 }
 0x155   : > { %695 = dma.done.wait (%p571_p7), %s488_s11, 256  }
 0x156   : > { %697 = vsyncadd (%p571_p7), %s488_s11, 4294967040  ;;  %p14_p8 = scmp.ge.s32.totalorder %s764_s12, 4   ;;  %s1022_s6 = smov %s704_s7 }
 0x157   : > { %s1023_s7 = smov %s708_s8  ;;  %s1024_s8 = smov %s776_s15 }
 0x158   : > { %s1025_s9 = smov %s764_s12  ;;  %16 = sbr.rel (!%p14_p8) target bundleno = 5 (0x5), region = 69 }
 0x15d   :  { %493 = vsyncpa [#allocation3], 1 }
 0x15e   :  { %495 = vsyncpa [#allocation3 + $0x1], 1 }
 0x15f   :  { %496 = vsyncpa [#allocation4], 1 }
 0x160   :  { %498 = vsyncpa [#allocation4 + $0x1], 1 }

</bundles_post_ra>
